<compile_context>
chip_gen: v6e
topology: v6e:2x2x1
jax: 0.10.0
libtpu: 0.0.40
codegen_flags: <defaults>
</compile_context>

<pallas_src>
import functools

import jax
import jax.numpy as jnp
from jax import lax
from jax.experimental import pallas as pl
from jax.experimental.pallas import tpu as pltpu


def _hard_neg_tile_kernel(imgs_ref, capsT_ref, row_ref, col_ref, diag_ref, *,
                          nmax, tm, tn, n_valid, n_pad):
    """One (row-tile i, col-tile j) step: MXU scores -> per-tile top-nmax partials."""
    i = pl.program_id(0)          # row tile    ("parallel")
    j = pl.program_id(1)          # column tile ("arbitrary"; diag_ref is resident)

    # scores[r, c] = <imgs_r, caps_c>: standard (M,K)x(K,N) contraction (caps is
    # pre-transposed in the wrapper), operands in input dtype, f32 accumulation.
    scores = jnp.dot(imgs_ref[...], capsT_ref[...],
                     preferred_element_type=jnp.float32)            # (tm, tn) f32

    neg_inf = jnp.float32(-jnp.inf)
    has_pad = n_pad != n_valid
    r = tm // tn                                                    # tm % tn == 0
    # The global diagonal intersects this tile iff j is one of the r column
    # tiles spanned by row tile i.
    diag_hit = jnp.logical_and(j >= i * r, j < (i + 1) * r)

    def _emit_partials(s):
        # Mask padded rows/cols to -inf (trace-time no-op when N is aligned).
        if has_pad:
            row_g = lax.broadcasted_iota(jnp.int32, (tm, tn), 0) + i * tm
            col_g = lax.broadcasted_iota(jnp.int32, (tm, tn), 1) + j * tn
            s = jnp.where(jnp.logical_or(row_g >= n_valid, col_g >= n_valid),
                          neg_inf, s)
        # Row-side and column-side top-nmax of this tile, interleaved so each
        # masking pass over the (tm, tn) tile can share its loads.
        work_r = s
        work_c = s
        for t in range(nmax):
            m_r = jnp.max(work_r, axis=1, keepdims=True)            # (tm, 1)
            m_c = jnp.max(work_c, axis=0, keepdims=True)            # (1, tn)
            # TODO(synk): the row-side partial store is only nmax lanes wide;
            # making it lane-dense would need a (tm,1)->(1,tm) relayout.
            row_ref[:, :, t:t + 1] = m_r.reshape(1, tm, 1)
            col_ref[:, t:t + 1, :] = m_c.reshape(1, 1, tn)
            if t + 1 < nmax:
                work_r = jnp.where(work_r == m_r, neg_inf, work_r)
                work_c = jnp.where(work_c == m_c, neg_inf, work_c)

    @pl.when(diag_hit)
    def _diag_tile():
        row_l = lax.broadcasted_iota(jnp.int32, (tm, tn), 0)
        col_l = lax.broadcasted_iota(jnp.int32, (tm, tn), 1)
        is_diag = row_l == col_l + (j - i * r) * tn
        # Emit the score-matrix diagonal (bit-identical to the MXU scores used
        # for the top-k); diag_ref stays resident across the whole j loop.
        dvals = jnp.sum(jnp.where(is_diag, scores, 0.0), axis=0,
                        keepdims=True)                               # (1, tn)
        if r == 1:
            diag_ref[...] = dvals.reshape(1, 1, tn)
        else:
            for kk in range(r):                                      # static offsets
                @pl.when(j == i * r + kk)
                def _store(kk=kk):
                    diag_ref[:, :, kk * tn:(kk + 1) * tn] = dvals.reshape(1, 1, tn)
        # Flip the sign of the diagonal entries: s[g, g] = -scores[g, g].
        _emit_partials(jnp.where(is_diag, -scores, scores))

    @pl.when(jnp.logical_not(diag_hit))
    def _off_diag_tile():
        # Off-diagonal tiles skip all diagonal iota/compare/select work.
        _emit_partials(scores)


_VMEM_BUDGET = 36 * 1024 * 1024   # keep the tile working set well inside v7x's 64 MiB
_VMEM_LIMIT = 48 * 1024 * 1024    # above the 16/32 MiB scoped defaults, below v7x physical


def _choose_tiles(n_pad, d, itemsize, nmax):
    tn = 256 if n_pad % 256 == 0 else 128
    cands = [t for t in (1024, 512, 256, 128)
             if t >= tn and t % tn == 0 and n_pad % t == 0]
    # Keep >= 2 row tiles when possible so both v7x TensorCores get work.
    two_core = [t for t in cands if n_pad // t >= 2]
    if two_core:
        cands = two_core
    for tm in cands:                                    # largest tile fitting VMEM
        est = (2 * tm * d * itemsize                    # double-buffered imgs blocks
               + 2 * d * tn * itemsize                  # double-buffered caps.T blocks
               + (4 if nmax > 1 else 2) * tm * tn * 4   # f32 score tile + working copies
               + 8 * (tm * nmax + nmax * tn + tm))      # partial / diag output blocks
        if est <= _VMEM_BUDGET:
            return tm, tn
    return cands[-1], tn


def hard_negative_contrastive_loss(imgs, caps, *, nmax=1, margin=0.2,
                                   lbd=0.0, lbd2=0.0):
    n, d = imgs.shape
    assert caps.shape == (n, d)
    nmax = int(nmax)
    itemsize = jnp.dtype(imgs.dtype).itemsize

    # Pad N up to a multiple of 128 (masked in-kernel, dropped in the epilogue).
    n_pad = ((n + 127) // 128) * 128
    tm, tn = _choose_tiles(n_pad, d, itemsize, nmax)
    gi, gj = n_pad // tm, n_pad // tn
    # TODO(synk): for very large D also tile the contraction (K) dimension.
    # TODO(synk): callers may pass bf16 imgs/caps for ~2x DMA + MXU throughput;
    # accumulation stays f32 either way.

    if n_pad != n:
        imgs_p = jnp.pad(imgs, ((0, n_pad - n), (0, 0)))
        caps_p = jnp.pad(caps, ((0, n_pad - n), (0, 0)))
    else:
        imgs_p, caps_p = imgs, caps
    caps_t = caps_p.T                      # (d, n_pad): K-major RHS for the MXU

    kernel = functools.partial(_hard_neg_tile_kernel, nmax=nmax, tm=tm, tn=tn,
                               n_valid=n, n_pad=n_pad)

    row_part, col_part, diag_part = pl.pallas_call(
        kernel,
        out_shape=(
            jax.ShapeDtypeStruct((gj, n_pad, nmax), jnp.float32),  # per-col-tile row top-nmax
            jax.ShapeDtypeStruct((gi, nmax, n_pad), jnp.float32),  # per-row-tile col top-nmax
            jax.ShapeDtypeStruct((gi, 1, tm), jnp.float32),        # scores diagonal
        ),
        grid=(gi, gj),
        in_specs=[
            pl.BlockSpec((tm, d), lambda i, j: (i, 0)),
            pl.BlockSpec((d, tn), lambda i, j: (0, j)),
        ],
        out_specs=(
            pl.BlockSpec((1, tm, nmax), lambda i, j: (j, i, 0)),
            pl.BlockSpec((1, nmax, tn), lambda i, j: (i, 0, j)),
            pl.BlockSpec((1, 1, tm), lambda i, j: (i, 0, 0)),
        ),
        compiler_params=pltpu.CompilerParams(
            dimension_semantics=("parallel", "arbitrary"),
            vmem_limit_bytes=_VMEM_LIMIT),
        cost_estimate=pl.CostEstimate(
            flops=2 * n_pad * n_pad * d,
            bytes_accessed=(1 + gi) * n_pad * d * itemsize
                           + 4 * (gj * n_pad * nmax + gi * nmax * n_pad + gi * tm),
            transcendentals=0),
    )(imgs_p, caps_t)

    # ---- tiny O(N * grid * nmax) epilogue in plain XLA -----------------------
    diag = diag_part.reshape(n_pad)[:n]
    neg_inf = jnp.float32(-jnp.inf)

    def _topk_desc(x, axis):
        # nmax iterative max/mask passes (much cheaper than a full sort here).
        outs, work = [], x
        for t in range(nmax):
            m = jnp.max(work, axis=axis, keepdims=True)
            outs.append(m)
            if t + 1 < nmax:
                work = jnp.where(work == m, neg_inf, work)
        return jnp.concatenate(outs, axis=axis) if nmax > 1 else outs[0]

    cand_i = jnp.moveaxis(row_part[:, :n, :], 0, 1).reshape(n, gj * nmax)
    cand_c = col_part[:, :, :n].reshape(gi * nmax, n)
    max_i = cand_i if gj == 1 else _topk_desc(cand_i, axis=1)       # (n, nmax)
    max_c = cand_c if gi == 1 else _topk_desc(cand_c, axis=0)       # (nmax, n)

    adj = (margin - diag) * (1.0 + lbd)
    neg_cap = jnp.sum(jnp.maximum(max_c * (1.0 - lbd) + adj[None, :], 0.0))
    neg_img = jnp.sum(jnp.maximum(max_i * (1.0 - lbd) + adj[:, None], 0.0))
    return neg_cap * (1.0 + lbd2) + neg_img * (1.0 - lbd2)


def _reference_loss(imgs, caps, nmax=1, margin=0.2, lbd=0.0, lbd2=0.0):
    scores = jnp.dot(imgs, caps.T, precision=lax.Precision.HIGHEST)
    diag = jnp.diag(scores)
    s = scores - 2.0 * jnp.diag(diag)
    sorted_cap = jnp.sort(s, axis=0)[::-1, :]
    sorted_img = jnp.sort(s, axis=1)[:, ::-1]
    max_c = sorted_cap[:nmax, :]
    max_i = sorted_img[:, :nmax]
    neg_cap = jnp.sum(jnp.maximum(
        max_c * (1.0 - lbd) + ((margin - diag) * (1.0 + lbd))[None, :], 0.0))
    neg_img = jnp.sum(jnp.maximum(
        max_i * (1.0 - lbd) + ((margin - diag) * (1.0 + lbd))[:, None], 0.0))
    return neg_cap * (1.0 + lbd2) + neg_img * (1.0 - lbd2)


if __name__ == "__main__":
    key = jax.random.PRNGKey(0)
    k1, k2, k3, k4 = jax.random.split(key, 4)

    # Small shape consistent with the module: batch of 8 paired (image, caption)
    # embeddings of dim 32 (exercises the N-padding + single-tile path).
    N, D = 8, 32
    imgs = jax.random.normal(k1, (N, D), dtype=jnp.float32)
    caps = jax.random.normal(k2, (N, D), dtype=jnp.float32)
    loss = jax.block_until_ready(
        hard_negative_contrastive_loss(imgs, caps, nmax=1, margin=0.2,
                                       lbd=0.0, lbd2=0.0))
    ref = _reference_loss(imgs, caps, nmax=1, margin=0.2, lbd=0.0, lbd2=0.0)
    assert jnp.allclose(loss, ref, rtol=2e-3, atol=2e-2), (loss, ref)

    # Tiled path: 2x2 grid of 256-wide tiles, nmax=2, non-trivial lbd/lbd2.
    N2, D2 = 512, 64
    imgs2 = jax.random.normal(k3, (N2, D2), dtype=jnp.float32)
    caps2 = jax.random.normal(k4, (N2, D2), dtype=jnp.float32)
    loss2 = jax.block_until_ready(
        hard_negative_contrastive_loss(imgs2, caps2, nmax=2, margin=0.2,
                                       lbd=0.1, lbd2=0.05))
    ref2 = _reference_loss(imgs2, caps2, nmax=2, margin=0.2, lbd=0.1, lbd2=0.05)
    assert jnp.allclose(loss2, ref2, rtol=2e-3, atol=2e-2), (loss2, ref2)

    print("KERNEL_OK")
</pallas_src>

<mosaic_0001>
module attributes {stable_mosaic.version = 11 : i64} {
  func.func @_hard_neg_tile_kernel(%arg0: i32, %arg1: i32, %arg2: memref<128x32xf32, #tpu.memory_space<vmem>>, %arg3: memref<32x128xf32, #tpu.memory_space<vmem>>, %arg4: memref<1x128x1xf32, #tpu.memory_space<vmem>>, %arg5: memref<1x1x128xf32, #tpu.memory_space<vmem>>, %arg6: memref<1x1x128xf32, #tpu.memory_space<vmem>>) attributes {dimension_semantics = [#tpu.dimension_semantics<parallel>, #tpu.dimension_semantics<arbitrary>], iteration_bounds = array<i64: 1, 1>, scalar_prefetch = 0 : i64, scratch_operands = 0 : i64, tpu.core_type = #tpu.core_type<tc>, window_params = [{transform_indices = @transform_0, window_bounds = array<i64: 128, 32>}, {transform_indices = @transform_1, window_bounds = array<i64: 32, 128>}, {transform_indices = @transform_2, window_bounds = array<i64: 1, 128, 1>}, {transform_indices = @transform_3, window_bounds = array<i64: 1, 1, 128>}, {transform_indices = @transform_4, window_bounds = array<i64: 1, 1, 128>}]} {
    %c0 = arith.constant 0 : index
    %c0_0 = arith.constant 0 : index
    %0 = vector.load %arg2[%c0, %c0_0] : memref<128x32xf32, #tpu.memory_space<vmem>>, vector<128x32xf32>
    %c0_1 = arith.constant 0 : index
    %c0_2 = arith.constant 0 : index
    %1 = vector.load %arg3[%c0_1, %c0_2] : memref<32x128xf32, #tpu.memory_space<vmem>>, vector<32x128xf32>
    %cst = arith.constant dense<0.000000e+00> : vector<128x128xf32>
    %2 = tpu.matmul %0, %1, %cst {dimension_numbers = #tpu.dot_dimension_numbers<[1], [0], [0], [1], [0, 0, 1, 1], [], []>} : vector<128x32xf32>, vector<32x128xf32>, vector<128x128xf32> -> vector<128x128xf32>
    %c1_i32 = arith.constant 1 : i32
    %3 = arith.muli %arg0, %c1_i32 : i32
    %4 = arith.cmpi sge, %arg1, %3 : i32
    %c1_i32_3 = arith.constant 1 : i32
    %5 = arith.addi %arg0, %c1_i32_3 : i32
    %c1_i32_4 = arith.constant 1 : i32
    %6 = arith.muli %5, %c1_i32_4 : i32
    %7 = arith.cmpi slt, %arg1, %6 : i32
    %8 = arith.andi %4, %7 : i1
    %9 = arith.extui %8 : i1 to i32
    %cst_5 = arith.constant 0xFF800000 : f32
    %c0_i32 = arith.constant 0 : i32
    %10 = arith.cmpi ne, %9, %c0_i32 : i32
    scf.if %10 {
      %14 = tpu.iota {dimensions = array<i32: 0>} : vector<128x128xi32>
      %15 = tpu.iota {dimensions = array<i32: 1>} : vector<128x128xi32>
      %c1_i32_8 = arith.constant 1 : i32
      %16 = arith.muli %arg0, %c1_i32_8 : i32
      %17 = arith.subi %arg1, %16 : i32
      %c128_i32 = arith.constant 128 : i32
      %18 = arith.muli %17, %c128_i32 : i32
      %19 = vector.broadcast %18 : i32 to vector<128x128xi32>
      %20 = arith.addi %15, %19 : vector<128x128xi32>
      %21 = arith.cmpi eq, %14, %20 : vector<128x128xi32>
      %cst_9 = arith.constant 0.000000e+00 : f32
      %22 = vector.broadcast %cst_9 : f32 to vector<128x128xf32>
      %23 = arith.select %21, %2, %22 : vector<128x128xi1>, vector<128x128xf32>
      %cst_10 = arith.constant dense<0.000000e+00> : vector<128xf32>
      %24 = vector.multi_reduction <add>, %23, %cst_10 [0] : vector<128x128xf32> to vector<128xf32>
      %25 = vector.shape_cast %24 : vector<128xf32> to vector<1x128xf32>
      %26 = vector.shape_cast %25 : vector<1x128xf32> to vector<1x1x128xf32>
      %c0_11 = arith.constant 0 : index
      %c0_12 = arith.constant 0 : index
      %c0_13 = arith.constant 0 : index
      %27 = vector.load %arg6[%c0_11, %c0_12, %c0_13] : memref<1x1x128xf32, #tpu.memory_space<vmem>>, vector<1x1x128xf32>
      tpu.vector_store %arg6[%c0_11, %c0_12, %c0_13], %26 {strides = array<i32>} : memref<1x1x128xf32, #tpu.memory_space<vmem>>, vector<1x1x128xf32>,
      %cst_14 = arith.constant 0.000000e+00 : f32
      %28 = vector.broadcast %cst_14 : f32 to vector<128x128xf32>
      %29 = arith.subf %28, %2 : vector<128x128xf32>
      %30 = arith.select %21, %29, %2 : vector<128x128xi1>, vector<128x128xf32>
      %31 = tpu.iota {dimensions = array<i32: 0>} : vector<128x128xi32>
      %c128_i32_15 = arith.constant 128 : i32
      %32 = arith.muli %arg0, %c128_i32_15 : i32
      %33 = vector.broadcast %32 : i32 to vector<128x128xi32>
      %34 = arith.addi %31, %33 : vector<128x128xi32>
      %35 = tpu.iota {dimensions = array<i32: 1>} : vector<128x128xi32>
      %c128_i32_16 = arith.constant 128 : i32
      %36 = arith.muli %arg1, %c128_i32_16 : i32
      %37 = vector.broadcast %36 : i32 to vector<128x128xi32>
      %38 = arith.addi %35, %37 : vector<128x128xi32>
      %c8_i32 = arith.constant 8 : i32
      %39 = vector.broadcast %c8_i32 : i32 to vector<128x128xi32>
      %40 = arith.cmpi sge, %34, %39 : vector<128x128xi32>
      %c8_i32_17 = arith.constant 8 : i32
      %41 = vector.broadcast %c8_i32_17 : i32 to vector<128x128xi32>
      %42 = arith.cmpi sge, %38, %41 : vector<128x128xi32>
      %43 = arith.ori %40, %42 : vector<128x128xi1>
      %44 = vector.broadcast %cst_5 : f32 to vector<128x128xf32>
      %45 = arith.select %43, %44, %30 : vector<128x128xi1>, vector<128x128xf32>
      %cst_18 = arith.constant dense<0xFF800000> : vector<128xf32>
      %46 = vector.multi_reduction <maximumf>, %45, %cst_18 [1] : vector<128x128xf32> to vector<128xf32>
      %47 = vector.shape_cast %46 : vector<128xf32> to vector<128x1xf32>
      %cst_19 = arith.constant dense<0xFF800000> : vector<128xf32>
      %48 = vector.multi_reduction <maximumf>, %45, %cst_19 [0] : vector<128x128xf32> to vector<128xf32>
      %49 = vector.shape_cast %48 : vector<128xf32> to vector<1x128xf32>
      %50 = vector.shape_cast %47 : vector<128x1xf32> to vector<1x128x1xf32>
      %c0_20 = arith.constant 0 : index
      %c0_21 = arith.constant 0 : index
      %c0_22 = arith.constant 0 : index
      %51 = vector.load %arg4[%c0_20, %c0_21, %c0_22] : memref<1x128x1xf32, #tpu.memory_space<vmem>>, vector<1x128x1xf32>
      tpu.vector_store %arg4[%c0_20, %c0_21, %c0_22], %50 {strides = array<i32>} : memref<1x128x1xf32, #tpu.memory_space<vmem>>, vector<1x128x1xf32>,
      %52 = vector.shape_cast %49 : vector<1x128xf32> to vector<1x1x128xf32>
      %c0_23 = arith.constant 0 : index
      %c0_24 = arith.constant 0 : index
      %c0_25 = arith.constant 0 : index
      %53 = vector.load %arg5[%c0_23, %c0_24, %c0_25] : memref<1x1x128xf32, #tpu.memory_space<vmem>>, vector<1x1x128xf32>
      tpu.vector_store %arg5[%c0_23, %c0_24, %c0_25], %52 {strides = array<i32>} : memref<1x1x128xf32, #tpu.memory_space<vmem>>, vector<1x1x128xf32>,
    } else {
    }
    %true = arith.constant true
    %11 = arith.xori %8, %true : i1
    %12 = arith.extui %11 : i1 to i32
    %cst_6 = arith.constant 0xFF800000 : f32
    %c0_i32_7 = arith.constant 0 : i32
    %13 = arith.cmpi ne, %12, %c0_i32_7 : i32
    scf.if %13 {
      %14 = tpu.iota {dimensions = array<i32: 0>} : vector<128x128xi32>
      %c128_i32 = arith.constant 128 : i32
      %15 = arith.muli %arg0, %c128_i32 : i32
      %16 = vector.broadcast %15 : i32 to vector<128x128xi32>
      %17 = arith.addi %14, %16 : vector<128x128xi32>
      %18 = tpu.iota {dimensions = array<i32: 1>} : vector<128x128xi32>
      %c128_i32_8 = arith.constant 128 : i32
      %19 = arith.muli %arg1, %c128_i32_8 : i32
      %20 = vector.broadcast %19 : i32 to vector<128x128xi32>
      %21 = arith.addi %18, %20 : vector<128x128xi32>
      %c8_i32 = arith.constant 8 : i32
      %22 = vector.broadcast %c8_i32 : i32 to vector<128x128xi32>
      %23 = arith.cmpi sge, %17, %22 : vector<128x128xi32>
      %c8_i32_9 = arith.constant 8 : i32
      %24 = vector.broadcast %c8_i32_9 : i32 to vector<128x128xi32>
      %25 = arith.cmpi sge, %21, %24 : vector<128x128xi32>
      %26 = arith.ori %23, %25 : vector<128x128xi1>
      %27 = vector.broadcast %cst_6 : f32 to vector<128x128xf32>
      %28 = arith.select %26, %27, %2 : vector<128x128xi1>, vector<128x128xf32>
      %cst_10 = arith.constant dense<0xFF800000> : vector<128xf32>
      %29 = vector.multi_reduction <maximumf>, %28, %cst_10 [1] : vector<128x128xf32> to vector<128xf32>
      %30 = vector.shape_cast %29 : vector<128xf32> to vector<128x1xf32>
      %cst_11 = arith.constant dense<0xFF800000> : vector<128xf32>
      %31 = vector.multi_reduction <maximumf>, %28, %cst_11 [0] : vector<128x128xf32> to vector<128xf32>
      %32 = vector.shape_cast %31 : vector<128xf32> to vector<1x128xf32>
      %33 = vector.shape_cast %30 : vector<128x1xf32> to vector<1x128x1xf32>
      %c0_12 = arith.constant 0 : index
      %c0_13 = arith.constant 0 : index
      %c0_14 = arith.constant 0 : index
      %34 = vector.load %arg4[%c0_12, %c0_13, %c0_14] : memref<1x128x1xf32, #tpu.memory_space<vmem>>, vector<1x128x1xf32>
      tpu.vector_store %arg4[%c0_12, %c0_13, %c0_14], %33 {strides = array<i32>} : memref<1x128x1xf32, #tpu.memory_space<vmem>>, vector<1x128x1xf32>,
      %35 = vector.shape_cast %32 : vector<1x128xf32> to vector<1x1x128xf32>
      %c0_15 = arith.constant 0 : index
      %c0_16 = arith.constant 0 : index
      %c0_17 = arith.constant 0 : index
      %36 = vector.load %arg5[%c0_15, %c0_16, %c0_17] : memref<1x1x128xf32, #tpu.memory_space<vmem>>, vector<1x1x128xf32>
      tpu.vector_store %arg5[%c0_15, %c0_16, %c0_17], %35 {strides = array<i32>} : memref<1x1x128xf32, #tpu.memory_space<vmem>>, vector<1x1x128xf32>,
    } else {
    }
    return
  }
  func.func @transform_0(%arg0: i32, %arg1: i32) -> (i32, i32) {
    %c0_i32 = arith.constant 0 : i32
    %c0_i32_0 = arith.constant 0 : i32
    return %arg0, %c0_i32 : i32, i32
  }
  func.func @transform_1(%arg0: i32, %arg1: i32) -> (i32, i32) {
    %c0_i32 = arith.constant 0 : i32
    %c0_i32_0 = arith.constant 0 : i32
    return %c0_i32, %arg1 : i32, i32
  }
  func.func @transform_2(%arg0: i32, %arg1: i32) -> (i32, i32, i32) {
    %c0_i32 = arith.constant 0 : i32
    %c0_i32_0 = arith.constant 0 : i32
    return %arg1, %arg0, %c0_i32 : i32, i32, i32
  }
  func.func @transform_3(%arg0: i32, %arg1: i32) -> (i32, i32, i32) {
    %c0_i32 = arith.constant 0 : i32
    %c0_i32_0 = arith.constant 0 : i32
    return %arg0, %c0_i32, %arg1 : i32, i32, i32
  }
  func.func @transform_4(%arg0: i32, %arg1: i32) -> (i32, i32, i32) {
    %c0_i32 = arith.constant 0 : i32
    %c0_i32_0 = arith.constant 0 : i32
    %c0_i32_1 = arith.constant 0 : i32
    return %arg0, %c0_i32, %c0_i32_0 : i32, i32, i32
  }
}

</mosaic_0001>

<bundles_post_ra>
// kernel: tpu_custom_call.1
= control target key start
LH: loop header
LB: loop body
LE: loop exit
PB: predicated region body
PF: predicated region fallthrough
CT: control target
= control target key end

     0   :  { %10 = vsyncpa [#allocation3], 0  ;;  %vm36_vm0 = vcmask 261120   ;;  %s1042_s0 = inlined_call_operand.vmem [shape: f32[128,32], index: 0, kind: input, shape index: {}]   ;;  %s1043_s1 = inlined_call_operand.vmem [shape: f32[32,128], index: 1, kind: input, shape index: {}]   ;;  %s1044_s2 = inlined_call_operand.vmem [shape: f32[1,128,1], index: 2, kind: output, shape index: {0}]   ;;  %s1045_s3 = inlined_call_operand.hbm [shape: f32[1,1,128], index: 3, kind: output, shape index: {1}]   ;;  %s1046_s4 = inlined_call_operand.hbm [shape: f32[1,1,128], index: 4, kind: output, shape index: {2}]  }
   0x1   :  { %v35_v0 = vld [vmem:[%s1043_s1 + $0x18] sm:$0xff]  ;;  %v34_v1 = vld [vmem:[%s1043_s1 + $0x10] sm:$0xff]  ;;  %v16_v2 = vld [vmem:[%s1042_s0] sm:$0xff] }
   0x2   :  { %718 = vmatprep.subr.mxu0 %v35_v0  ;;  %750 = vmatprep.subr.mxu1 %v35_v0  ;;  %v33_v3 = vld [vmem:[%s1043_s1 + $0x8] sm:$0xff]  ;;  %v32_v4 = vld [vmem:[%s1043_s1] sm:$0xff] }
   0x3   :  { %719 = vmatpush3.msra.mxu0 %v35_v0  ;;  %726 = vmatprep.mubr.msk.f32.mxu0 %vm36_vm0, %v16_v2  ;;  %v17_v5 = vld [vmem:[%s1042_s0 + $0x8] sm:$0xff] }
   0x4   :  { %720 = vmatprep.subr.mxu0 %v34_v1  ;;  %754 = vmatpush3.msra.mxu1 %v35_v0 }
   0x5   :  { %721 = vmatpush3.msra.mxu0 %v34_v1  ;;  %751 = vmatprep.subr.mxu1 %v34_v1 }
   0x6   :  { %722 = vmatprep.subr.mxu0 %v33_v3  ;;  %755 = vmatpush3.msra.mxu1 %v34_v1 }
   0x7   :  { %723 = vmatpush3.msra.mxu0 %v33_v3  ;;  %752 = vmatprep.subr.mxu1 %v33_v3 }
   0x8   :  { %11 = vsyncpa [#allocation5], 0  ;;  %724 = vmatprep.subr.mxu0 %v32_v4  ;;  %v18_v6 = vld [vmem:[%s1042_s0 + $0x10] sm:$0xff]  ;;  %756 = vmatpush3.msra.mxu1 %v33_v3  ;;  %v24_v7 = vld [vmem:[%s1042_s0 + $0x40] sm:$0xff]  ;;  %v805_v12 = vmov -inf   ;;  %vm469_vm1 = vcmask 7168   ;;  %v237_v34 = vlaneseq }
   0x9   :  { %725 = vmatpush3.msra.mxu0 %v32_v4  ;;  %753 = vmatprep.subr.mxu1 %v32_v4  ;;  %v25_v8 = vld [vmem:[%s1042_s0 + $0x48] sm:$0xff]  ;;  %v26_v9 = vld [vmem:[%s1042_s0 + $0x50] sm:$0xff]  ;;  %v19_v10 = vld [vmem:[%s1042_s0 + $0x18] sm:$0xff] }
   0xa   :  { %727 = vmatmul.mubr.msk.f32.vlgmr.msra.gmra.mxu0 %vm36_vm0, %v17_v5  ;;  %757 = vmatpush3.msra.mxu1 %v32_v4  ;;  %v20_v11 = vld [vmem:[%s1042_s0 + $0x20] sm:$0xff]  ;;  %v27_v13 = vld [vmem:[%s1042_s0 + $0x58] sm:$0xff]  ;;  %v21_v15 = vld [vmem:[%s1042_s0 + $0x28] sm:$0xff]  ;;  %v975_v35 = vshrl.u32 %v237_v34, 7  ;;  %v978_v37 = vand.u32 127, %v237_v34 }
   0xb   :  { %729 = vmatprep.mubr.msk.f32.mxu0 %vm36_vm0, %v18_v6  ;;  %738 = vmatprep.mubr.msk.f32.mxu1 %vm36_vm0, %v24_v7  ;;  %v28_v14 = vld [vmem:[%s1042_s0 + $0x60] sm:$0xff]  ;;  %v22_v16 = vld [vmem:[%s1042_s0 + $0x30] sm:$0xff]  ;;  %v29_v17 = vld [vmem:[%s1042_s0 + $0x68] sm:$0xff] }
   0xc   :  { %739 = vmatmul.mubr.msk.f32.vlgmr.msra.gmra.mxu1 %vm36_vm0, %v25_v8  ;;  %420 = vmax.xlane.f32.xlu1 %v805_v12  ;;  %v30_v18 = vld [vmem:[%s1042_s0 + $0x70] sm:$0xff]  ;;  %v23_v19 = vld [vmem:[%s1042_s0 + $0x38] sm:$0xff]  ;;  %v239_v36 = vadd.s32 8, %v975_v35  ;;  %vm260_vm2 = vcmp.eq.s32.totalorder %v975_v35, %v978_v37  ;;  %v241_v39 = vadd.s32 24, %v975_v35  ;;  %v240_v40 = vadd.s32 16, %v975_v35 }
   0xd   :  { %741 = vmatprep.mubr.msk.f32.mxu1 %vm36_vm0, %v26_v9  ;;  %418 = vmax.xlane.f32.xlu0 %v805_v12  ;;  %v31_v20 = vld [vmem:[%s1042_s0 + $0x78] sm:$0xff]  ;;  %vm383_vm4 = vcmp.ge.s32.totalorder %v978_v37, 8  ;;  %v242_v45 = vadd.s32 32, %v975_v35  ;;  %v243_v47 = vadd.s32 40, %v975_v35  ;;  %v245_v60 = vadd.s32 56, %v975_v35  ;;  %s806_s0 = smov [#allocation2]  }
   0xe   :  { %730 = vmatmul.mubr.msk.f32.gmra.mxu0 %vm36_vm0, %v19_v10  ;;  %vm261_vm3 = vcmp.eq.s32.totalorder %v239_v36, %v978_v37  ;;  %vm263_vm5 = vcmp.eq.s32.totalorder %v241_v39, %v978_v37  ;;  %vm262_vm6 = vcmp.eq.s32.totalorder %v240_v40, %v978_v37  ;;  %v244_v61 = vadd.s32 48, %v975_v35  ;;  %s658_s28 = sshll.u32 %s806_s0, 4  ;;  %s659_s28 = int_to_ptr.vmem [resolvable:$true] %s658_s28 }
   0xf   :  { %732 = vmatprep.mubr.msk.f32.mxu0 %vm36_vm0, %v20_v11  ;;  %vm264_vm7 = vcmp.eq.s32.totalorder %v242_v45, %v978_v37  ;;  %vm265_vm8 = vcmp.eq.s32.totalorder %v243_v47, %v978_v37  ;;  %v246_v1 = vadd.s32 64, %v975_v35  ;;  %vm267_vm9 = vcmp.eq.s32.totalorder %v245_v60, %v978_v37  ;;  %s761_s29 = scalar_lea.vmem %s659_s28, 16  ;;  %s765_s30 = scalar_lea.vmem %s659_s28, 32 }
  0x10   :  { %742 = vmatmul.mubr.msk.f32.gmra.mxu1 %vm36_vm0, %v27_v13  ;;  %422 = vmax.xlane.f32.xlu1 %v805_v12  ;;  %vm266_vm10 = vcmp.eq.s32.totalorder %v244_v61, %v978_v37  ;;  %v247_v8 = vadd.s32 72, %v975_v35  ;;  %v248_v13 = vadd.s32 80, %v975_v35  ;;  %p762_p0 = scmp.ne.s32.totalorder %s659_s28, %s761_s29  ;;  %p766_p1 = scmp.lt.s32.totalorder %s659_s28, %s659_s28 }
  0x11   :  { %744 = vmatprep.mubr.msk.f32.mxu1 %vm36_vm0, %v28_v14  ;;  %424 = vmax.xlane.f32.xlu0 %v805_v12  ;;  %vm268_vm11 = vcmp.eq.s32.totalorder %v246_v1, %v978_v37  ;;  %p767_p2 = scmp.lt.s32.totalorder %s765_s30, %s761_s29 }
  0x12   :  { %733 = vmatmul.mubr.msk.f32.gmra.mxu0 %vm36_vm0, %v21_v15  ;;  %vm269_vm12 = vcmp.eq.s32.totalorder %v247_v8, %v978_v37  ;;  %vm270_vm13 = vcmp.eq.s32.totalorder %v248_v13, %v978_v37 }
  0x13   :  { %735 = vmatprep.mubr.msk.f32.mxu0 %vm36_vm0, %v22_v16  ;;  %p768_p3 = por %p767_p2, %p766_p1 }
  0x14   :  { %745 = vmatmul.mubr.msk.f32.gmra.mxu1 %vm36_vm0, %v29_v17  ;;  %426 = vmax.xlane.f32.xlu1 %v805_v12 }
  0x15   :  { %747 = vmatprep.mubr.msk.f32.mxu1 %vm36_vm0, %v30_v18  ;;  %428 = vmax.xlane.f32.xlu0 %v805_v12  ;;  %v249_v18 = vadd.s32 88, %v975_v35  ;;  %p769_p4 = pnand %p768_p3, %p762_p0 }
  0x16   :  { %736 = vmatmul.mubr.msk.f32.gmra.mxu0 %vm36_vm0, %v23_v19 }
  0x17   :  { %vm271_vm14 = vcmp.eq.s32.totalorder %v249_v18, %v978_v37 }
  0x18   :  { %748 = vmatmul.mubr.msk.f32.gmra.mxu1 %vm36_vm0, %v31_v20  ;;  %430 = vmax.xlane.f32.xlu1 %v805_v12 }
  0x19   :  { %432 = vmax.xlane.f32.xlu0 %v805_v12 }
  0x1c   :  { %434 = vmax.xlane.f32.xlu1 %v805_v12 }
  0x1d   :  { %436 = vmax.xlane.f32.xlu0 %v805_v12 }
  0x20   :  { %438 = vmax.xlane.f32.xlu1 %v805_v12 }
  0x21   :  { %440 = vmax.xlane.f32.xlu0 %v805_v12 }
  0x24   :  { %442 = vmax.xlane.f32.xlu1 %v805_v12 }
  0x28   :  { %446 = vmax.xlane.f32.xlu1 %v805_v12 }
  0x95   :  { %v421_v21 = vpop.xlane.xlu1 %420 }
  0x96   :  { %472 = vst.msk [vmem:[%s1044_s2 + $0x10] sm:$0xff] %vm469_vm1, %v421_v21  ;;  %v419_v22 = vpop.xlane.xlu0 %418 }
  0x97   :  { %471 = vst.msk [vmem:[%s1044_s2 + $0x8] sm:$0xff] %vm469_vm1, %v419_v22 }
  0x99   :  { %v423_v23 = vpop.xlane.xlu1 %422 }
  0x9a   :  { %473 = vst.msk [vmem:[%s1044_s2 + $0x18] sm:$0xff] %vm469_vm1, %v423_v23  ;;  %v425_v24 = vpop.xlane.xlu0 %424 }
  0x9b   :  { %474 = vst.msk [vmem:[%s1044_s2 + $0x20] sm:$0xff] %vm469_vm1, %v425_v24  ;;  %v250_v24 = vadd.s32 96, %v975_v35 }
  0x9d   :  { %v427_v25 = vpop.xlane.xlu1 %426 }
  0x9e   :  { %475 = vst.msk [vmem:[%s1044_s2 + $0x28] sm:$0xff] %vm469_vm1, %v427_v25  ;;  %v429_v26 = vpop.xlane.xlu0 %428 }
  0x9f   :  { %476 = vst.msk [vmem:[%s1044_s2 + $0x30] sm:$0xff] %vm469_vm1, %v429_v26 }
  0xa1   :  { %v431_v27 = vpop.xlane.xlu1 %430 }
  0xa2   :  { %477 = vst.msk [vmem:[%s1044_s2 + $0x38] sm:$0xff] %vm469_vm1, %v431_v27  ;;  %v433_v28 = vpop.xlane.xlu0 %432  ;;  %v251_v27 = vadd.s32 104, %v975_v35 }
  0xa3   :  { %478 = vst.msk [vmem:[%s1044_s2 + $0x40] sm:$0xff] %vm469_vm1, %v433_v28 }
  0xa5   :  { %v435_v29 = vpop.xlane.xlu1 %434 }
  0xa6   :  { %479 = vst.msk [vmem:[%s1044_s2 + $0x48] sm:$0xff] %vm469_vm1, %v435_v29  ;;  %v437_v30 = vpop.xlane.xlu0 %436 }
  0xa7   :  { %480 = vst.msk [vmem:[%s1044_s2 + $0x50] sm:$0xff] %vm469_vm1, %v437_v30 }
  0xa9   :  { %v439_v31 = vpop.xlane.xlu1 %438 }
  0xaa   :  { %481 = vst.msk [vmem:[%s1044_s2 + $0x58] sm:$0xff] %vm469_vm1, %v439_v31  ;;  %v441_v32 = vpop.xlane.xlu0 %440 }
  0xab   :  { %482 = vst.msk [vmem:[%s1044_s2 + $0x60] sm:$0xff] %vm469_vm1, %v441_v32 }
  0xad   :  { %v443_v33 = vpop.xlane.xlu1 %442 }
  0xae   :  { %483 = vst.msk [vmem:[%s1044_s2 + $0x68] sm:$0xff] %vm469_vm1, %v443_v33 }
  0xb1   :  { %v447_v20 = vpop.xlane.xlu1 %446 }
  0xb2   :  { %485 = vst.msk [vmem:[%s1044_s2 + $0x78] sm:$0xff] %vm469_vm1, %v447_v20 }
  0xca   :  { %v728_v38 = vpop.f32.mrf.mxu0 }
  0xcb   :  { %v277_v49 = vsel %vm261_vm3, %v728_v38, 0.0 }
  0xcc   :  { %v151_v41 = vpop.f32.mrf.mxu0  ;;  %v740_v42 = vpop.f32.mrf.mxu1 }
  0xcd   :  { %v276_v43 = vsel %vm260_vm2, %v151_v41, 0.0  ;;  %v314_v44 = vsub.f32 0.0, %v151_v41  ;;  %v285_v25 = vsel %vm269_vm12, %v740_v42, 0.0 }
  0xce   :  { %v731_v46 = vpop.f32.mrf.mxu0  ;;  %v191_v48 = vpop.f32.mrf.mxu1  ;;  %v292_v52 = vadd.f32 %v277_v49, %v276_v43 }
  0xcf   :  { %v330_v50 = vsel %vm260_vm2, %v314_v44, %v151_v41  ;;  %v279_v55 = vsel %vm263_vm5, %v731_v46, 0.0  ;;  %v284_v19 = vsel %vm268_vm11, %v191_v48, 0.0 }
  0xd0   :  { %v161_v51 = vpop.f32.mrf.mxu0  ;;  %v400_v53 = vsel %vm383_vm4, -inf, %v330_v50  ;;  %v996_v54 = vpop.f32.mrf.mxu1 }
  0xd1   :  { %v278_v56 = vsel %vm262_vm6, %v161_v51, 0.0  ;;  %416 = vmax.xlane.f32.xlu0 %v400_v53  ;;  %v463_v57 = vrot.slane %v400_v53, 4 }
  0xd2   :  { %v293_v58 = vadd.f32 %v292_v52, %v278_v56  ;;  %v734_v59 = vpop.f32.mrf.mxu0  ;;  %v201_v2 = vpop.f32.mrf.mxu1 }
  0xd3   :  { %v464_v62 = vmax.f32 %v400_v53, %v463_v57  ;;  %v281_v3 = vsel %vm265_vm8, %v734_v59, 0.0  ;;  %v286_v28 = vsel %vm270_vm13, %v201_v2, 0.0 }
  0xd4   :  { %v171_v63 = vpop.f32.mrf.mxu0  ;;  %v294_v0 = vadd.f32 %v293_v58, %v279_v55  ;;  %v746_v14 = vpop.f32.mrf.mxu1 }
  0xd5   :  { %v280_v4 = vsel %vm264_vm7, %v171_v63, 0.0  ;;  %444 = vmax.xlane.f32.xlu0 %v805_v12  ;;  %v465_v5 = vrot.slane %v464_v62, 2 }
  0xd6   :  { %v295_v6 = vadd.f32 %v294_v0, %v280_v4  ;;  %v737_v7 = vpop.f32.mrf.mxu0  ;;  %v211_v23 = vpop.f32.mrf.mxu1 }
  0xd7   :  { %v466_v9 = vmax.f32 %v464_v62, %v465_v5  ;;  %v283_v15 = vsel %vm267_vm9, %v737_v7, 0.0 }
  0xd8   :  { %v181_v10 = vpop.f32.mrf.mxu0  ;;  %v296_v11 = vadd.f32 %v295_v6, %v281_v3 }
  0xd9   :  { %v282_v16 = vsel %vm266_vm10, %v181_v10, 0.0  ;;  %v467_v12 = vrot.slane %v466_v9, 1 }
  0xda   :  { %v297_v17 = vadd.f32 %v296_v11, %v282_v16 }
  0xdb   :  { %v468_v21 = vmax.f32 %v466_v9, %v467_v12 }
  0xdc   :  { %v298_v22 = vadd.f32 %v297_v17, %v283_v15 }
  0xdd   :  { %486 = vst [vmem:[#allocation2] sm:$0x1] %v468_v21 }
  0xde   :  { %v299_v26 = vadd.f32 %v298_v22, %v284_v19 }
  0xdf   :  { %772 = shalt.err (!%p769_p4)
}
  0xe0   :  { %661 = dma.vmem_to_hbm [thread:$0]  %s659_s28, 16, %s1045_s3, [#allocation3]   ;;  %v300_v29 = vadd.f32 %v299_v26, %v285_v25  ;;  %vm272_vm15 = vcmp.eq.s32.totalorder %v250_v24, %v978_v37  ;;  %v749_v30 = vpop.f32.mrf.mxu1  ;;  %v252_v31 = vadd.s32 112, %v975_v35  ;;  %v287_v32 = vsel %vm271_vm14, %v996_v54, 0.0 }
  0xe1   :  { %vm273_vm0 = vcmp.eq.s32.totalorder %v251_v27, %v978_v37  ;;  %v253_v34 = vadd.s32 120, %v975_v35  ;;  %v288_v36 = vsel %vm272_vm15, %v211_v23, 0.0  ;;  %s807_s3 = smov [#allocation4]  }
  0xe2   :  { %v301_v33 = vadd.f32 %v300_v29, %v286_v28  ;;  %v221_v39 = vpop.f32.mrf.mxu1  ;;  %vm274_vm2 = vcmp.eq.s32.totalorder %v252_v31, %v978_v37  ;;  %v289_v40 = vsel %vm273_vm0, %v746_v14, 0.0  ;;  %s668_s6 = sshll.u32 %s807_s3, 4  ;;  %s669_s6 = int_to_ptr.vmem [resolvable:$true] %s668_s6 }
  0xe3   :  { %vm275_vm3 = vcmp.eq.s32.totalorder %v253_v34, %v978_v37  ;;  %v290_v42 = vsel %vm274_vm2, %v221_v39, 0.0  ;;  %s781_s7 = scalar_lea.vmem %s669_s6, 16  ;;  %s785_s8 = scalar_lea.vmem %s669_s6, 32 }
  0xe4   :  { %v302_v38 = vadd.f32 %v301_v33, %v287_v32  ;;  %v291_v44 = vsel %vm275_vm3, %v749_v30, 0.0  ;;  %p782_p5 = scmp.ne.s32.totalorder %s669_s6, %s781_s7  ;;  %p786_p6 = scmp.lt.s32.totalorder %s669_s6, %s669_s6 }
  0xe5   :  { %p787_p7 = scmp.lt.s32.totalorder %s785_s8, %s781_s7 }
  0xe6   :  { %v303_v41 = vadd.f32 %v302_v38, %v288_v36 }
  0xe7   :  { %p788_p8 = por %p787_p7, %p786_p6 }
  0xe8   :  { %v304_v43 = vadd.f32 %v303_v41, %v289_v40 }
  0xe9   :  { %p789_p9 = pnand %p788_p8, %p782_p5 }
  0xea   :  { %v305_v45 = vadd.f32 %v304_v43, %v290_v42 }
  0xec   :  { %v306_v46 = vadd.f32 %v305_v45, %v291_v44 }
  0xee   :  { %v307_v47 = vrot.slane %v306_v46, 4 }
  0xf0   :  { %v308_v48 = vadd.f32 %v307_v47, %v306_v46 }
  0xf2   :  { %v309_v49 = vrot.slane %v308_v48, 2 }
  0xf4   :  { %v310_v50 = vadd.f32 %v309_v49, %v308_v48 }
  0xf6   :  { %v311_v35 = vrot.slane %v310_v50, 1 }
  0xf8   :  { %v312_v51 = vadd.f32 %v311_v35, %v310_v50 }
  0xfa   :  { %313 = vst [vmem:[#allocation4] sm:$0x1] %v312_v51 }
  0xfb   :  { %792 = shalt.err (!%p789_p9)
}
  0xfc   :  { %671 = dma.vmem_to_hbm [thread:$0]  %s669_s6, 16, %s1046_s4, [#allocation5]  }
 0x15a   :  { %v417_v37 = vpop.xlane.xlu0 %416 }
 0x15b   :  { %470 = vst.msk [vmem:[%s1044_s2] sm:$0xff] %vm469_vm1, %v417_v37 }
 0x15e   :  { %v445_v52 = vpop.xlane.xlu0 %444 }
 0x15f   :  { %484 = vst.msk [vmem:[%s1044_s2 + $0x70] sm:$0xff] %vm469_vm1, %v445_v52 }
 0x160   :  { %801 = dma.done.wait [#allocation3], 16  }
 0x161   :  { %802 = vsyncadd [#allocation3], 4294967280 }
 0x162   :  { %803 = dma.done.wait [#allocation5], 16  }
 0x163   :  { %804 = vsyncadd [#allocation5], 4294967280 }
 0x164   :  { %680 = vsyncpa [#allocation3], 1 }
 0x165   :  { %681 = vsyncpa [#allocation5], 1 }

</bundles_post_ra>
